<compile_context>
chip_gen: v6e
topology: v6e:2x2x1
jax: 0.10.0
libtpu: 0.0.40
codegen_flags: <defaults>
</compile_context>

<pallas_src>
import functools

import jax
import jax.numpy as jnp
from jax.experimental import pallas as pl
from jax.experimental.pallas import tpu as pltpu


def _sublayer_connection_kernel(x_ref, s_ref, o_ref, *, d, eps):
    # x_ref / s_ref / o_ref: (tm, d) blocks; last dim is the full feature dim,
    # so reductions over axis -1 are over exactly the d valid elements.
    x = x_ref[...].astype(jnp.float32)
    s = s_ref[...].astype(jnp.float32)

    mean = jnp.sum(s, axis=-1, keepdims=True) * (1.0 / d)
    diff = s - mean

    # torch.std defaults to the unbiased estimator (divide by d - 1).
    denom = d - 1 if d > 1 else 1  # guard d == 1 (degenerate, matches "document" note)
    var = jnp.sum(diff * diff, axis=-1, keepdims=True) * (1.0 / denom)
    std = jnp.sqrt(var)

    # Divide goes to the EUP (free slot under the DMA bound).
    ln = diff * pl.reciprocal(std + eps, approx=False)

    o_ref[...] = (x + ln).astype(o_ref.dtype)


def sublayer_connection(x, sublayer_out, *, eps=1e-6):
    """x, sublayer_out: (..., d).  Returns x + LayerNorm(sublayer_out)."""
    assert x.shape == sublayer_out.shape
    d = x.shape[-1]
    lead = x.shape[:-1]
    x2 = x.reshape(-1, d)
    s2 = sublayer_out.reshape(-1, d)
    M = x2.shape[0]

    itemsize = jnp.dtype(x.dtype).itemsize
    sublane = {4: 8, 2: 16, 1: 32}.get(itemsize, 8)

    # Adaptive row tile: ~4 MiB per block target; keep the total
    # double-buffered footprint (3 arrays x 2 buffers) within ~40 MiB so it
    # fits v7x's 64 MiB VMEM with headroom (also fine on v5e/v6e).
    target_block_bytes = 4 << 20
    vmem_budget_bytes = 40 << 20
    row_bytes = max(d * itemsize, 1)

    tm = (target_block_bytes // row_bytes) // sublane * sublane
    tm = max(tm, sublane)
    tm = min(tm, 2048)
    tm_vmem_cap = (vmem_budget_bytes // (6 * row_bytes)) // sublane * sublane
    tm = min(tm, max(tm_vmem_cap, sublane))
    # Never larger than the (sublane-rounded) problem size.
    tm = min(tm, ((M + sublane - 1) // sublane) * sublane)

    grid = (pl.cdiv(M, tm),)  # boundary block is masked by Pallas; rows independent

    kernel = functools.partial(_sublayer_connection_kernel, d=d, eps=eps)

    out = pl.pallas_call(
        kernel,
        out_shape=jax.ShapeDtypeStruct((M, d), x.dtype),
        grid_spec=pltpu.PrefetchScalarGridSpec(
            num_scalar_prefetch=0,
            grid=grid,
            in_specs=[
                pl.BlockSpec((tm, d), lambda i: (i, 0)),  # x rows tile
                pl.BlockSpec((tm, d), lambda i: (i, 0)),  # sublayer(x) rows tile
            ],
            out_specs=pl.BlockSpec((tm, d), lambda i: (i, 0)),
        ),
        compiler_params=pltpu.CompilerParams(
            dimension_semantics=("parallel",),
            vmem_limit_bytes=48 << 20,
        ),
    )(x2, s2)

    return out.reshape(*lead, d)


if __name__ == "__main__":
    batch, seq, d_model = 2, 8, 100
    eps = 1e-6

    key = jax.random.PRNGKey(0)
    kx, kw, kb = jax.random.split(key, 3)
    x = jax.random.normal(kx, (batch, seq, d_model), dtype=jnp.float32)

    # Representative `sublayer`: a simple Linear, applied as plain JAX since
    # SublayerConnection takes an arbitrary callable at forward time.
    bound = 1.0 / (d_model ** 0.5)
    w = jax.random.uniform(kw, (d_model, d_model), jnp.float32, -bound, bound)
    b = jax.random.uniform(kb, (d_model,), jnp.float32, -bound, bound)
    sublayer = lambda t: t @ w + b

    s = sublayer(x)
    out = sublayer_connection(x, s, eps=eps)
    out = jax.block_until_ready(out)

    # Pure-JAX reference matching torch semantics (std is unbiased, N-1).
    mean = s.mean(-1, keepdims=True)
    std = jnp.std(s, axis=-1, ddof=1, keepdims=True)
    ref = x + (s - mean) / (std + eps)

    assert out.shape == x.shape
    assert jnp.allclose(out, ref, atol=1e-5, rtol=1e-5)
    print("KERNEL_OK")
</pallas_src>

<mosaic_0001>
module attributes {stable_mosaic.version = 11 : i64} {
  func.func @_sublayer_connection_kernel(%arg0: i32, %arg1: memref<16x100xf32, #tpu.memory_space<vmem>>, %arg2: memref<16x100xf32, #tpu.memory_space<vmem>>, %arg3: memref<16x100xf32, #tpu.memory_space<vmem>>) attributes {dimension_semantics = [#tpu.dimension_semantics<parallel>], iteration_bounds = array<i64: 1>, scalar_prefetch = 0 : i64, scratch_operands = 0 : i64, tpu.core_type = #tpu.core_type<tc>, window_params = [{transform_indices = @transform_0, window_bounds = array<i64: 16, 100>}, {transform_indices = @transform_1, window_bounds = array<i64: 16, 100>}, {transform_indices = @transform_2, window_bounds = array<i64: 16, 100>}]} {
    %c0 = arith.constant 0 : index
    %c0_0 = arith.constant 0 : index
    %0 = vector.load %arg1[%c0, %c0_0] : memref<16x100xf32, #tpu.memory_space<vmem>>, vector<16x100xf32>
    %c0_1 = arith.constant 0 : index
    %c0_2 = arith.constant 0 : index
    %1 = vector.load %arg2[%c0_1, %c0_2] : memref<16x100xf32, #tpu.memory_space<vmem>>, vector<16x100xf32>
    %cst = arith.constant dense<0.000000e+00> : vector<16xf32>
    %2 = vector.multi_reduction <add>, %1, %cst [1] : vector<16x100xf32> to vector<16xf32>
    %3 = vector.shape_cast %2 : vector<16xf32> to vector<16x1xf32>
    %cst_3 = arith.constant 0.00999999977 : f32
    %4 = vector.broadcast %cst_3 : f32 to vector<16x1xf32>
    %5 = arith.mulf %3, %4 : vector<16x1xf32>
    %6 = vector.broadcast %5 : vector<16x1xf32> to vector<16x100xf32>
    %7 = arith.subf %1, %6 : vector<16x100xf32>
    %8 = arith.mulf %7, %7 : vector<16x100xf32>
    %cst_4 = arith.constant dense<0.000000e+00> : vector<16xf32>
    %9 = vector.multi_reduction <add>, %8, %cst_4 [1] : vector<16x100xf32> to vector<16xf32>
    %10 = vector.shape_cast %9 : vector<16xf32> to vector<16x1xf32>
    %cst_5 = arith.constant 0.0101010101 : f32
    %11 = vector.broadcast %cst_5 : f32 to vector<16x1xf32>
    %12 = arith.mulf %10, %11 : vector<16x1xf32>
    %13 = math.sqrt %12 : vector<16x1xf32>
    %cst_6 = arith.constant 9.99999997E-7 : f32
    %14 = vector.broadcast %cst_6 : f32 to vector<16x1xf32>
    %15 = arith.addf %13, %14 : vector<16x1xf32>
    %16 = tpu.reciprocal %15 : vector<16x1xf32> -> vector<16x1xf32>
    %17 = vector.broadcast %16 : vector<16x1xf32> to vector<16x100xf32>
    %18 = arith.mulf %7, %17 : vector<16x100xf32>
    %19 = arith.addf %0, %18 : vector<16x100xf32>
    %c0_7 = arith.constant 0 : index
    %c0_8 = arith.constant 0 : index
    %20 = vector.load %arg3[%c0_7, %c0_8] : memref<16x100xf32, #tpu.memory_space<vmem>>, vector<16x100xf32>
    tpu.vector_store %arg3[%c0_7, %c0_8], %19 {strides = array<i32>} : memref<16x100xf32, #tpu.memory_space<vmem>>, vector<16x100xf32>,
    return
  }
  func.func @transform_0(%arg0: i32) -> (i32, i32) {
    %c0_i32 = arith.constant 0 : i32
    %c0_i32_0 = arith.constant 0 : i32
    return %arg0, %c0_i32 : i32, i32
  }
  func.func @transform_1(%arg0: i32) -> (i32, i32) {
    %c0_i32 = arith.constant 0 : i32
    %c0_i32_0 = arith.constant 0 : i32
    return %arg0, %c0_i32 : i32, i32
  }
  func.func @transform_2(%arg0: i32) -> (i32, i32) {
    %c0_i32 = arith.constant 0 : i32
    %c0_i32_0 = arith.constant 0 : i32
    return %arg0, %c0_i32 : i32, i32
  }
}

</mosaic_0001>

<bundles_post_ra>
// kernel: tpu_custom_call.1
= control target key start
LH: loop header
LB: loop body
LE: loop exit
PB: predicated region body
PF: predicated region fallthrough
CT: control target
= control target key end

     0   :  { %7 = vsyncpa [#allocation3], 0  ;;  %s230_s0 = inlined_call_operand.hbm [shape: f32[16,100], index: 0, kind: input, shape index: {}]   ;;  %s231_s1 = inlined_call_operand.hbm [shape: f32[16,100], index: 1, kind: input, shape index: {}]   ;;  %s232_s2 = inlined_call_operand.hbm [shape: f32[16,100], index: 2, kind: output, shape index: {}]  }
   0x1   :  { %8 = vsyncpa [#allocation6], 0 }
   0x2   :  { %9 = vsyncpa [#allocation4], 0  ;;  %s186_s9 = smov [#allocation2]  }
   0x3   :  { %s15_s10 = sshll.u32 %s186_s9, 4  ;;  %s16_s10 = int_to_ptr.vmem [resolvable:$true] %s15_s10 }
   0x4   :  { %s128_s11 = scalar_lea.vmem %s16_s10, 256  ;;  %p133_p1 = scmp.lt.s32.totalorder %s16_s10, %s16_s10 }
   0x5   :  { %p129_p0 = scmp.ne.s32.totalorder %s16_s10, %s128_s11  ;;  %p134_p2 = scmp.lt.s32.totalorder %s128_s11, %s128_s11 }
   0x7   :  { %p135_p3 = por %p134_p2, %p133_p1 }
   0x9   :  { %p136_p4 = pnand %p135_p3, %p129_p0 }
   0xb   :  { %139 = shalt.err (!%p136_p4)
}
   0xc   :  { %s187_s12 = smov 128   ;;  %s188_s13 = smov 8  }
   0xd   :  { %21 = dma.hbm_to_vmem [thread:$0]  %s230_s0, 256, %s16_s10, [#allocation3], %s187_s12, %s187_s12, %s188_s13  }
   0xe   :  { %s189_s16 = smov [#allocation5]  }
   0xf   :  { %s27_s17 = sshll.u32 %s189_s16, 4  ;;  %s28_s17 = int_to_ptr.vmem [resolvable:$true] %s27_s17 }
  0x10   :  { %s148_s18 = scalar_lea.vmem %s28_s17, 256  ;;  %p153_p6 = scmp.lt.s32.totalorder %s28_s17, %s28_s17 }
  0x11   :  { %p149_p5 = scmp.ne.s32.totalorder %s28_s17, %s148_s18  ;;  %p154_p7 = scmp.lt.s32.totalorder %s148_s18, %s148_s18 }
  0x13   :  { %p155_p8 = por %p154_p7, %p153_p6 }
  0x15   :  { %p156_p9 = pnand %p155_p8, %p149_p5 }
  0x17   :  { %159 = shalt.err (!%p156_p9)
}
  0x18   :  { %33 = dma.hbm_to_vmem [thread:$0]  %s231_s1, 256, %s28_s17, [#allocation6], %s187_s12, %s187_s12, %s188_s13  }
  0x19   :  { %180 = dma.done.wait [#allocation3], 256  }
  0x1a   :  { %181 = vsyncadd [#allocation3], 4294967040 }
  0x1b   :  { %182 = dma.done.wait [#allocation6], 256  }
  0x1c   :  { %183 = vsyncadd [#allocation6], 4294967040  ;;  %vm44_vm0 = vcmask 818176   ;;  %v42_v0 = vld [vmem:[#allocation5] sm:$0xff]  ;;  %v43_v1 = vld [vmem:[#allocation5 + $0x8] sm:$0xff]  ;;  %s190_s0 = smov [#allocation7]  }
  0x1d   :  { %v45_v2 = vsel %vm44_vm0, %v42_v0, 0.0  ;;  %v48_v3 = vsel %vm44_vm0, %v43_v1, 0.0  ;;  %v40_v31 = vld [vmem:[#allocation2] sm:$0xff]  ;;  %v41_v35 = vld [vmem:[#allocation2 + $0x8] sm:$0xff]  ;;  %s94_s1 = sshll.u32 %s190_s0, 4  ;;  %s95_s1 = int_to_ptr.vmem [resolvable:$true] %s94_s1 }
  0x1e   :  { %46 = vadd.xlane.f32.xlu0 %v45_v2  ;;  %s160_s21 = scalar_lea.vmem %s95_s1, 256  ;;  %p165_p11 = scmp.lt.s32.totalorder %s95_s1, %s95_s1 }
  0x1f   :  { %p161_p10 = scmp.ne.s32.totalorder %s95_s1, %s160_s21  ;;  %p166_p12 = scmp.lt.s32.totalorder %s160_s21, %s160_s21 }
  0x21   :  { %p167_p13 = por %p166_p12, %p165_p11 }
  0x22   :  { %49 = vadd.xlane.f32.xlu0 %v48_v3 }
  0x23   :  { %p168_p0 = pnand %p167_p13, %p161_p10 }
  0xa7   :  { %v47_v4 = vpop.xlane.xlu0 %46 }
  0xa8   :  { %v51_v5 = vmul.f32 0.01, %v47_v4 }
  0xaa   :  { %v53_v6 = vsub.f32 %v42_v0, %v51_v5 }
  0xab   :  { %v50_v7 = vpop.xlane.xlu0 %49 }
  0xac   :  { %v52_v8 = vmul.f32 0.01, %v50_v7  ;;  %v55_v9 = vmul.f32 %v53_v6, %v53_v6 }
  0xae   :  { %v54_v10 = vsub.f32 %v43_v1, %v52_v8  ;;  %v57_v11 = vsel %vm44_vm0, %v55_v9, 0.0 }
  0xaf   :  { %58 = vadd.xlane.f32.xlu1 %v57_v11 }
  0xb0   :  { %v56_v12 = vmul.f32 %v54_v10, %v54_v10 }
  0xb2   :  { %v60_v13 = vsel %vm44_vm0, %v56_v12, 0.0 }
  0xb3   :  { %61 = vadd.xlane.f32.xlu1 %v60_v13 }
 0x138   :  { %v59_v14 = vpop.xlane.xlu1 %58 }
 0x139   :  { %v63_v15 = vmul.f32 0.01010101, %v59_v14 }
 0x13b   :  { %112 = vrsqrt.f32 %v63_v15  ;;  %vm67_vm1 = vcmp.eq.f32.partialorder %v63_v15, inf  ;;  %v70_v20 = vand.u32 2147483648, %v63_v15  ;;  %vm69_vm2 = vcmp.eq.f32.partialorder %v63_v15, 0.0 }
 0x13c   :  { %v62_v16 = vpop.xlane.xlu1 %61 }
 0x13d   :  { %v64_v17 = vmul.f32 0.01010101, %v62_v16 }
 0x13f   :  { %114 = vrsqrt.f32 %v64_v17  ;;  %vm74_vm3 = vcmp.eq.f32.partialorder %v64_v17, inf  ;;  %v77_v26 = vand.u32 2147483648, %v64_v17  ;;  %vm76_vm4 = vcmp.eq.f32.partialorder %v64_v17, 0.0 }
 0x148   :  { %v113_v18 = vpop.eup %112 }
 0x149   :  { %v66_v19 = vmul.f32 %v113_v18, %v63_v15 }
 0x14b   :  { %v68_v21 = vsel %vm67_vm1, %v63_v15, %v66_v19 }
 0x14c   :  { %v115_v22 = vpop.eup %114  ;;  %v71_v23 = vsel %vm69_vm2, %v70_v20, %v68_v21 }
 0x14d   :  { %v79_v24 = vadd.f32 1e-06, %v71_v23  ;;  %v73_v25 = vmul.f32 %v115_v22, %v64_v17 }
 0x14f   :  { %116 = vrcp.f32 %v79_v24  ;;  %v75_v27 = vsel %vm74_vm3, %v64_v17, %v73_v25 }
 0x150   :  { %v78_v28 = vsel %vm76_vm4, %v77_v26, %v75_v27 }
 0x151   :  { %v80_v29 = vadd.f32 1e-06, %v78_v28 }
 0x153   :  { %118 = vrcp.f32 %v80_v29 }
 0x15c   :  { %v117_v30 = vpop.eup %116 }
 0x15d   :  { %v83_v32 = vmul.f32 %v117_v30, %v53_v6 }
 0x15f   :  { %v85_v33 = vadd.f32 %v83_v32, %v40_v31 }
 0x160   :  { %v119_v34 = vpop.eup %118 }
 0x161   :  { %v84_v36 = vmul.f32 %v119_v34, %v54_v10  ;;  %87 = vst.msk [vmem:[#allocation7] sm:$0xff] %vm44_vm0, %v85_v33 }
 0x163   :  { %v86_v37 = vadd.f32 %v84_v36, %v41_v35 }
 0x165   :  { %88 = vst.msk [vmem:[#allocation7 + $0x8] sm:$0xff] %vm44_vm0, %v86_v37 }
 0x166   :  { %171 = shalt.err (!%p168_p0)
}
 0x167   :  { %100 = dma.vmem_to_hbm [thread:$0]  %s95_s1, 256, %s232_s2, [#allocation4], %s187_s12, %s187_s12, %s188_s13  }
 0x168   :  { %184 = dma.done.wait [#allocation4], 256  }
 0x169   :  { %185 = vsyncadd [#allocation4], 4294967040 }
 0x16a   :  { %104 = vsyncpa [#allocation3], 1 }
 0x16b   :  { %105 = vsyncpa [#allocation6], 1 }
 0x16c   :  { %106 = vsyncpa [#allocation4], 1 }

</bundles_post_ra>
